<compile_context>
chip_gen: v7x
topology: tpu7x:2x2x1
jax: 0.10.0
libtpu: 0.0.40
codegen_flags: <defaults>
</compile_context>

<pallas_src>
import math

import jax
import jax.numpy as jnp
from jax.experimental import pallas as pl
from jax.experimental.pallas import tpu as pltpu

_SMALL_BYTES = 1 << 20          # below this, plain XLA broadcast wins
_MAX_BLOCK_BYTES = 6 * 1024 * 1024   # 2x-buffered output stays < v5e 16 MiB scoped VMEM
_TARGET_LANES = 2048            # preferred lane-dense slab width
_MIN_GRID_STEPS = 4             # let v7x's 2 TCs both get writeback work


def _round_up(x: int, m: int) -> int:
    return ((x + m - 1) // m) * m


def _fill_kernel(row_ref, out_ref):
    # row_ref: (sub, cols) -- embedding row 0 pre-tiled across a full sublane
    #          group and the slab width (constant index_map -> fetched once).
    # out_ref: (tile_rows, cols) output block; tile_rows % sub == 0.
    reps = out_ref.shape[0] // row_ref.shape[0]
    out_ref[...] = jnp.tile(row_ref[...], (reps, 1))


def _run_fill(row_src: jax.Array, rows: int, cols: int, dtype) -> jax.Array:
    """Writes a (rows, cols) array whose every sublane-group is `row_src`."""
    itemsize = jnp.dtype(dtype).itemsize
    sub = row_src.shape[0]

    # Tile height: as big as the byte budget allows, never more than needed,
    # and capped so the grid keeps >= _MIN_GRID_STEPS steps when possible.
    rows_cap_bytes = max(sub, (_MAX_BLOCK_BYTES // (cols * itemsize)) // sub * sub)
    tile_rows = min(_round_up(rows, sub), rows_cap_bytes)
    if rows >= _MIN_GRID_STEPS * sub:
        tile_rows = min(tile_rows, max(sub, (rows // _MIN_GRID_STEPS) // sub * sub))

    grid = (pl.cdiv(rows, tile_rows),)

    return pl.pallas_call(
        _fill_kernel,
        out_shape=jax.ShapeDtypeStruct((rows, cols), dtype),
        grid=grid,
        in_specs=[pl.BlockSpec((sub, cols), lambda i: (0, 0))],
        out_specs=pl.BlockSpec((tile_rows, cols), lambda i: (i, 0)),
        compiler_params=pltpu.CompilerParams(
            dimension_semantics=("parallel",),
        ),
        cost_estimate=pl.CostEstimate(
            flops=0,
            transcendentals=0,
            bytes_accessed=rows * cols * itemsize + sub * cols * itemsize,
        ),
    )(row_src)


def dummy_edge_encoder(emb_weight: jax.Array, edge_index: jax.Array,
                       *, force_kernel: bool = False) -> jax.Array:
    """Pallas equivalent of DummyEdgeEncoder.forward.

    emb_weight: (1, emb_dim) embedding table.
    edge_index: (2, num_edges) int array (only its shape is used; the module
                builds all-zero dummy indices from it).
    Returns edge_attr of shape (num_edges, emb_dim), dtype = emb_weight.dtype.

    Note: num_edges is read statically from edge_index.shape, so under jit
    this re-traces per edge count (same as any shape change).
    """
    num_edges = int(edge_index.shape[1])
    emb_dim = int(emb_weight.shape[1])
    dtype = emb_weight.dtype
    itemsize = jnp.dtype(dtype).itemsize
    total = num_edges * emb_dim

    # ---- tiny / empty problems: a fused XLA broadcast beats any kernel ----
    if total == 0 or (not force_kernel and total * itemsize < _SMALL_BYTES):
        return jnp.broadcast_to(emb_weight[0], (num_edges, emb_dim))

    sub = max(8, 32 // itemsize)   # 8 rows f32, 16 bf16, 32 int8 (sublane group)

    if emb_dim % 128 == 0:
        # ---- fast path: output is already lane-dense, write it directly ----
        row_src = jnp.tile(emb_weight[0], (sub, 1))          # (sub, emb_dim)
        return _run_fill(row_src, num_edges, emb_dim, dtype)  # no reshape, no slice

    # ---- general path: lane-dense slab (lane_w = k * emb_dim, 128-aligned) ---
    k0 = 128 // math.gcd(emb_dim, 128)          # minimal edges-per-row factor
    max_k = max(k0, (_TARGET_LANES // emb_dim) // k0 * k0)
    # Prefer the widest k that divides num_edges -> final reshape is free.
    k = None
    m = max_k // k0
    while m >= 1:
        cand = m * k0
        if num_edges % cand == 0:
            k = cand
            break
        m -= 1
    needs_slice = k is None
    if k is None:
        k = max_k                                 # ragged tail; slice below
    lane_w = emb_dim * k
    rows = pl.cdiv(num_edges, k)

    # Pre-tile row 0 across a full sublane group and the slab width (tiny).
    row_src = jnp.tile(emb_weight[0], (sub, k))   # (sub, lane_w)

    out_slab = _run_fill(row_src, rows, lane_w, dtype)

    if not needs_slice:
        # Contiguous row-major reinterpretation -> cheap reshape, no copy.
        return out_slab.reshape(num_edges, emb_dim)

    # Rare fallback: num_edges has no suitable divisor; one extra output copy.
    # TODO(synk): avoidable only with a non-rectangular writeback pattern.
    return out_slab.reshape(-1)[:total].reshape(num_edges, emb_dim)


if __name__ == "__main__":
    key = jax.random.PRNGKey(0)

    def _check(num_edges: int, emb_dim: int, force_kernel: bool):
        case_key = jax.random.fold_in(key, num_edges * 131 + emb_dim)
        w_key, e_key = jax.random.split(case_key)
        # torch.nn.Embedding default init is N(0, 1).
        emb_weight = jax.random.normal(w_key, (1, emb_dim), dtype=jnp.float32)
        # Only edge_index's shape matters (dummy indices are all zeros).
        edge_index = jax.random.randint(e_key, (2, num_edges), minval=0,
                                        maxval=max(num_edges, 2), dtype=jnp.int32)

        edge_attr = dummy_edge_encoder(emb_weight, edge_index,
                                       force_kernel=force_kernel)
        edge_attr = jax.block_until_ready(edge_attr)

        ref = jnp.broadcast_to(emb_weight[0], (num_edges, emb_dim))
        assert edge_attr.shape == (num_edges, emb_dim)
        assert edge_attr.dtype == emb_weight.dtype
        assert jnp.array_equal(edge_attr, ref), (num_edges, emb_dim, force_kernel)

    _check(16, 32, False)     # tiny -> plain-XLA broadcast short-circuit
    _check(512, 32, True)     # slab path, emb_dim < 128, k divides num_edges
    _check(1000, 48, True)    # slab path, ragged last grid block
    _check(1003, 48, True)    # slab path, no divisor -> slice fallback
    _check(1024, 128, True)   # direct path, emb_dim % 128 == 0, 4 grid steps

    print("KERNEL_OK")
</pallas_src>

<mosaic_0001>
module attributes {stable_mosaic.version = 11 : i64} {
  func.func @_fill_kernel(%arg0: i32, %arg1: memref<8x2048xf32, #tpu.memory_space<vmem>>, %arg2: memref<8x2048xf32, #tpu.memory_space<vmem>>) attributes {dimension_semantics = [#tpu.dimension_semantics<parallel>], iteration_bounds = array<i64: 1>, scalar_prefetch = 0 : i64, scratch_operands = 0 : i64, tpu.core_type = #tpu.core_type<tc>, window_params = [{pipeline_mode = #tpu.pipeline_mode<synchronous>, transform_indices = @transform_0, window_bounds = array<i64: 8, 2048>}, {transform_indices = @transform_1, window_bounds = array<i64: 8, 2048>}]} {
    %c0 = arith.constant 0 : index
    %c0_0 = arith.constant 0 : index
    %0 = vector.load %arg1[%c0, %c0_0] : memref<8x2048xf32, #tpu.memory_space<vmem>>, vector<8x2048xf32>
    %c0_1 = arith.constant 0 : index
    %c0_2 = arith.constant 0 : index
    %1 = vector.load %arg2[%c0_1, %c0_2] : memref<8x2048xf32, #tpu.memory_space<vmem>>, vector<8x2048xf32>
    tpu.vector_store %arg2[%c0_1, %c0_2], %0 {strides = array<i32>} : memref<8x2048xf32, #tpu.memory_space<vmem>>, vector<8x2048xf32>,
    return
  }
  func.func @transform_0(%arg0: i32) -> (i32, i32) {
    %c0_i32 = arith.constant 0 : i32
    %c0_i32_0 = arith.constant 0 : i32
    %c0_i32_1 = arith.constant 0 : i32
    return %c0_i32, %c0_i32_0 : i32, i32
  }
  func.func @transform_1(%arg0: i32) -> (i32, i32) {
    %c0_i32 = arith.constant 0 : i32
    %c0_i32_0 = arith.constant 0 : i32
    return %arg0, %c0_i32 : i32, i32
  }
}

</mosaic_0001>

<bundles_post_ra>
// kernel: tpu_custom_call.1
= control target key start
LH: loop header
LB: loop body
LE: loop exit
PB: predicated region body
PF: predicated region fallthrough
CT: control target
= control target key end

     0   :  { %6 = vsyncpa [#allocation3], 0  ;;  %s154_s0 = inlined_call_operand.hbm [shape: f32[8,2048], index: 0, kind: input, shape index: {}]   ;;  %s155_s1 = inlined_call_operand.hbm [shape: f32[8,2048], index: 1, kind: output, shape index: {}]  }
   0x1   :  { %7 = vsyncpa [#allocation4], 0  ;;  %s118_s6 = smov [#allocation2]   ;;  %s70_s10 = scalar_lea.hbm %s154_s0, 2048 }
   0x2   :  { %s14_s7 = sshll.u32 %s118_s6, 4  ;;  %p71_p0 = scmp.ne.s32.totalorder %s154_s0, %s70_s10  ;;  %s15_s7 = int_to_ptr.vmem [resolvable:$true] %s14_s7 }
   0x3   :  { %p74_p1 = scmp.lt.u32.totalorder %s70_s10, %s154_s0 }
   0x5   :  { %p76_p2 = pnand %p74_p1, %p71_p0 }
   0x7   :  { %79 = shalt.err (!%p76_p2)
}
   0x8   :  { %s80_s15 = scalar_lea.vmem %s15_s7, 2048  ;;  %p85_p4 = scmp.lt.s32.totalorder %s15_s7, %s15_s7 }
   0x9   :  { %p81_p3 = scmp.ne.s32.totalorder %s15_s7, %s80_s15  ;;  %p86_p5 = scmp.lt.s32.totalorder %s80_s15, %s80_s15 }
   0xb   :  { %p87_p6 = por %p86_p5, %p85_p4 }
   0xd   :  { %p88_p7 = pnand %p87_p6, %p81_p3 }
   0xf   :  { %91 = shalt.err (!%p88_p7)
}
  0x10   :  { %17 = dma.hbm_to_vmem [thread:$0]  %s154_s0, 2048, %s15_s7, [#allocation3]  }
  0x11   :  { %114 = dma.done.wait [#allocation3], 2048  }
  0x12   :  { %115 = vsyncadd [#allocation3], 4294965248  ;;  %v21_v0 = vld [vmem:[#allocation2] sm:$0xff]  ;;  %v22_v1 = vld [vmem:[#allocation2 + $0x8] sm:$0xff]  ;;  %s119_s18 = smov [#allocation5]  }
  0x13   :  { %v23_v2 = vld [vmem:[#allocation2 + $0x10] sm:$0xff]  ;;  %37 = vst [vmem:[#allocation5] sm:$0xff] %v21_v0  ;;  %38 = vst [vmem:[#allocation5 + $0x8] sm:$0xff] %v22_v1  ;;  %v24_v3 = vld [vmem:[#allocation2 + $0x18] sm:$0xff]  ;;  %s59_s19 = sshll.u32 %s119_s18, 4  ;;  %s60_s19 = int_to_ptr.vmem [resolvable:$true] %s59_s19 }
  0x14   :  { %39 = vst [vmem:[#allocation5 + $0x10] sm:$0xff] %v23_v2  ;;  %v25_v4 = vld [vmem:[#allocation2 + $0x20] sm:$0xff]  ;;  %v26_v5 = vld [vmem:[#allocation2 + $0x28] sm:$0xff]  ;;  %40 = vst [vmem:[#allocation5 + $0x18] sm:$0xff] %v24_v3  ;;  %s92_s0 = scalar_lea.vmem %s60_s19, 2048  ;;  %p97_p9 = scmp.lt.s32.totalorder %s60_s19, %s60_s19 }
  0x15   :  { %41 = vst [vmem:[#allocation5 + $0x20] sm:$0xff] %v25_v4  ;;  %42 = vst [vmem:[#allocation5 + $0x28] sm:$0xff] %v26_v5  ;;  %v27_v6 = vld [vmem:[#allocation2 + $0x30] sm:$0xff]  ;;  %v28_v7 = vld [vmem:[#allocation2 + $0x38] sm:$0xff]  ;;  %p93_p8 = scmp.ne.s32.totalorder %s60_s19, %s92_s0  ;;  %p98_p10 = scmp.lt.s32.totalorder %s92_s0, %s92_s0 }
  0x16   :  { %v29_v8 = vld [vmem:[#allocation2 + $0x40] sm:$0xff]  ;;  %43 = vst [vmem:[#allocation5 + $0x30] sm:$0xff] %v27_v6  ;;  %44 = vst [vmem:[#allocation5 + $0x38] sm:$0xff] %v28_v7  ;;  %v30_v9 = vld [vmem:[#allocation2 + $0x48] sm:$0xff] }
  0x17   :  { %45 = vst [vmem:[#allocation5 + $0x40] sm:$0xff] %v29_v8  ;;  %v31_v10 = vld [vmem:[#allocation2 + $0x50] sm:$0xff]  ;;  %v32_v11 = vld [vmem:[#allocation2 + $0x58] sm:$0xff]  ;;  %46 = vst [vmem:[#allocation5 + $0x48] sm:$0xff] %v30_v9  ;;  %p99_p11 = por %p98_p10, %p97_p9 }
  0x18   :  { %47 = vst [vmem:[#allocation5 + $0x50] sm:$0xff] %v31_v10  ;;  %48 = vst [vmem:[#allocation5 + $0x58] sm:$0xff] %v32_v11  ;;  %v33_v12 = vld [vmem:[#allocation2 + $0x60] sm:$0xff]  ;;  %v34_v13 = vld [vmem:[#allocation2 + $0x68] sm:$0xff] }
  0x19   :  { %v35_v14 = vld [vmem:[#allocation2 + $0x70] sm:$0xff]  ;;  %49 = vst [vmem:[#allocation5 + $0x60] sm:$0xff] %v33_v12  ;;  %50 = vst [vmem:[#allocation5 + $0x68] sm:$0xff] %v34_v13  ;;  %v36_v15 = vld [vmem:[#allocation2 + $0x78] sm:$0xff]  ;;  %p100_p12 = pnand %p99_p11, %p93_p8 }
  0x1a   :  { %51 = vst [vmem:[#allocation5 + $0x70] sm:$0xff] %v35_v14  ;;  %52 = vst [vmem:[#allocation5 + $0x78] sm:$0xff] %v36_v15 }
  0x1b   :  { %103 = shalt.err (!%p100_p12)
}
  0x1c   :  { %s104_s22 = scalar_lea.hbm %s155_s1, 2048 }
  0x1d   :  { %p105_p13 = scmp.ne.s32.totalorder %s155_s1, %s104_s22  ;;  %p108_p0 = scmp.lt.u32.totalorder %s104_s22, %s155_s1 }
  0x1f   :  { %p110_p1 = pnand %p108_p0, %p105_p13 }
  0x21   :  { %113 = shalt.err (!%p110_p1)
}
  0x22   :  { %62 = dma.vmem_to_hbm [thread:$0]  %s60_s19, 2048, %s155_s1, [#allocation4]  }
  0x23   :  { %116 = dma.done.wait [#allocation4], 2048  }
  0x24   :  { %117 = vsyncadd [#allocation4], 4294965248 }
  0x25   :  { %66 = vsyncpa [#allocation3], 1 }
  0x26   :  { %67 = vsyncpa [#allocation4], 1 }

</bundles_post_ra>
